<compile_context>
chip_gen: v7x
topology: tpu7x:2x2x1
jax: 0.10.0
libtpu: 0.0.40
codegen_flags: <defaults>
</compile_context>

<pallas_src>
import functools

import jax
import jax.numpy as jnp
from jax.experimental import pallas as pl
from jax.experimental.pallas import tpu as pltpu

FPN_DIM = 32
K_ALIGN = 16                      # bf16 sublane packing for the contraction dim
VMEM_LIMIT = 32 * 1024 * 1024     # fits scoped VMEM on v5e/v6e and 64 MiB v7x


def _round_up(x, m):
    return (x + m - 1) // m * m


def _pick_tm(m):
    """Largest lane tile (multiple of 128) dividing M with >= 2 grid steps."""
    for t in (1024, 512, 256, 128):
        if m % t == 0 and m // t >= 2:
            return t
    return m  # small / ragged case: single full-extent block


# ----------------------------------------------------------------------------
# Pallas GEMM kernel: out[Cout, M_tile] = sum_i W_i @ X_i  (+ bias, +add, ReLU)
# ----------------------------------------------------------------------------
def _gemm_cm_kernel(*refs, n_terms, relu, has_add):
    xs = refs[0:n_terms]
    ws = refs[n_terms:2 * n_terms]
    b_ref = refs[2 * n_terms]
    add_ref = refs[2 * n_terms + 1] if has_add else None
    o_ref = refs[-1]

    acc = jnp.dot(ws[0][...], xs[0][...], preferred_element_type=jnp.float32)
    for t in range(1, n_terms):
        acc = acc + jnp.dot(ws[t][...], xs[t][...],
                            preferred_element_type=jnp.float32)
    acc = acc + b_ref[...]                              # (Cout, 1) lane broadcast
    if has_add:
        acc = acc + add_ref[...].astype(jnp.float32)    # fused FPN top-down add
    if relu:
        acc = jnp.maximum(acc, 0.0)
    o_ref[...] = acc.astype(o_ref.dtype)


def gemm_cm(xs, ws, b, *, relu=False, add=None, out_dtype=jnp.bfloat16):
    """out[Cout, M] = relu?( sum_i ws[i] @ xs[i] + b (+ add) ).

    xs[i]: (K_i, M) activations, ws[i]: (Cout, K_i) weights (VMEM-resident),
    b: (Cout,) f32.  Grid is tiled over M (lane axis) and marked parallel.
    """
    n_terms = len(xs)
    cout = int(ws[0].shape[0])
    M = int(xs[0].shape[1])
    tm = _pick_tm(M)
    grid = (M // tm,)

    in_specs = []
    args = []
    for x in xs:
        k = int(x.shape[0])
        in_specs.append(pl.BlockSpec((k, tm), lambda m: (0, m)))
        args.append(x.astype(jnp.bfloat16))
    for w in ws:
        k = int(w.shape[1])
        in_specs.append(pl.BlockSpec((cout, k), lambda m: (0, 0)))   # resident
        args.append(w.astype(jnp.bfloat16))
    in_specs.append(pl.BlockSpec((cout, 1), lambda m: (0, 0)))        # resident
    args.append(b.reshape(cout, 1).astype(jnp.float32))
    if add is not None:
        in_specs.append(pl.BlockSpec((cout, tm), lambda m: (0, m)))
        args.append(add.astype(jnp.bfloat16))

    flops = 2 * cout * M * sum(int(x.shape[0]) for x in xs)
    bytes_accessed = (sum(int(x.size) for x in xs) * 2
                      + sum(int(w.size) for w in ws) * 2
                      + cout * 4
                      + (int(add.size) * 2 if add is not None else 0)
                      + cout * M * jnp.dtype(out_dtype).itemsize)

    return pl.pallas_call(
        functools.partial(_gemm_cm_kernel, n_terms=n_terms, relu=relu,
                          has_add=add is not None),
        out_shape=jax.ShapeDtypeStruct((cout, M), out_dtype),
        grid=grid,
        in_specs=in_specs,
        out_specs=pl.BlockSpec((cout, tm), lambda m: (0, m)),
        compiler_params=pltpu.CompilerParams(
            dimension_semantics=("parallel",),
            vmem_limit_bytes=VMEM_LIMIT),
        cost_estimate=pl.CostEstimate(
            flops=int(flops), transcendentals=0,
            bytes_accessed=int(bytes_accessed)),
    )(*args)


# ----------------------------------------------------------------------------
# Conv helpers (glue = channel-major im2col / reshapes; GEMM = Pallas kernel)
# ----------------------------------------------------------------------------
def _im2col_cm(x_cm, kh, kw, stride, pad):
    # x_cm: (Cin, N, H, W) -> patches (Kp, N*Ho*Wo) with K = kh*kw*Cin padded
    # to a multiple of K_ALIGN (zero rows; matching zero cols in the weight).
    # TODO(synk): patches are still materialized in HBM (k*k traffic blowup);
    # full fusion needs halo'd spatial tiles loaded via pl.ds inside the kernel.
    c, n, h, w = x_cm.shape
    xp = jnp.pad(x_cm, ((0, 0), (0, 0), (pad, pad), (pad, pad)))
    ho = (h + 2 * pad - kh) // stride + 1
    wo = (w + 2 * pad - kw) // stride + 1
    taps = []
    for i in range(kh):
        for j in range(kw):
            taps.append(xp[:, :, i:i + ho * stride:stride, j:j + wo * stride:stride])
    k = kh * kw * c
    kp = _round_up(k, K_ALIGN)
    if kp != k:
        taps.append(jnp.zeros((kp - k, n, ho, wo), x_cm.dtype))
    patches = jnp.concatenate(taps, axis=0)          # (Kp, N, Ho, Wo)
    return patches.reshape(kp, n * ho * wo), ho, wo


def conv2d_cm(x_cm, param, *, stride=1, relu=False, add_cm=None,
              out_dtype=jnp.bfloat16):
    """Conv on channel-major activations (Cin, N, H, W) -> (Cout, N, Ho, Wo)."""
    w2d, b, kh, kw = param
    c, n, h, w = x_cm.shape
    if kh == 1 and kw == 1:
        patches, ho, wo = x_cm.reshape(c, n * h * w), h, w   # no im2col for 1x1
    else:
        patches, ho, wo = _im2col_cm(x_cm, kh, kw, stride, kh // 2)
    add2d = None
    if add_cm is not None:
        add2d = add_cm.reshape(add_cm.shape[0], n * ho * wo)
    out2d = gemm_cm([patches], [w2d], b, relu=relu, add=add2d,
                    out_dtype=out_dtype)
    return out2d.reshape(w2d.shape[0], n, ho, wo)


def upsample2x_cm(x_cm):
    # nearest-neighbour x2 on (C, N, H, W); matches F.interpolate(mode='nearest').
    # TODO(synk): could be folded into the consumer kernel's index_map (block//2)
    # to avoid materializing the 4x tensor in HBM.
    return jnp.repeat(jnp.repeat(x_cm, 2, axis=2), 2, axis=3)


# ----------------------------------------------------------------------------
# Parameters (deterministic, in-script)
# ----------------------------------------------------------------------------
def _init_conv(key, kh, kw, cin, cout):
    kw_key, kb_key = jax.random.split(key)
    fan_in = kh * kw * cin
    w = jax.random.normal(kw_key, (cout, kh, kw, cin), jnp.float32) / jnp.sqrt(
        jnp.float32(fan_in))
    b = 0.01 * jax.random.normal(kb_key, (cout,), jnp.float32)
    k = kh * kw * cin
    kp = _round_up(k, K_ALIGN)
    w2d = w.reshape(cout, k)
    if kp != k:
        w2d = jnp.pad(w2d, ((0, 0), (0, kp - k)))
    return (w2d.astype(jnp.bfloat16), b, kh, kw)


def init_params(key):
    keys = jax.random.split(key, 13)
    p = {}
    # encoder
    p["stem"] = _init_conv(keys[0], 3, 3, 3, 8)        # /2
    p["layer1"] = _init_conv(keys[1], 3, 3, 8, 16)     # /4  -> C3
    p["layer2"] = _init_conv(keys[2], 3, 3, 16, 32)    # /8  -> C4
    p["layer3"] = _init_conv(keys[3], 3, 3, 32, 64)    # /16 -> C5
    # neck (FPN)
    p["lat3"] = _init_conv(keys[4], 1, 1, 16, FPN_DIM)
    p["lat4"] = _init_conv(keys[5], 1, 1, 32, FPN_DIM)
    p["lat5"] = _init_conv(keys[6], 1, 1, 64, FPN_DIM)
    p["fpn3"] = _init_conv(keys[7], 3, 3, FPN_DIM, FPN_DIM)
    p["fpn4"] = _init_conv(keys[8], 3, 3, FPN_DIM, FPN_DIM)
    p["fpn5"] = _init_conv(keys[9], 3, 3, FPN_DIM, FPN_DIM)
    # ms2one ("Naive": concat multi-scale -> 1x1 conv), stored pre-split so the
    # kernel can do a K-split accumulation without materializing the concat.
    fan_in = 3 * FPN_DIM
    ms_ws = []
    for i in range(3):
        wk = jax.random.normal(keys[10 + i] if i < 2 else keys[12],
                               (FPN_DIM, FPN_DIM), jnp.float32)
        ms_ws.append((wk / jnp.sqrt(jnp.float32(fan_in))).astype(jnp.bfloat16))
    ms_b = 0.01 * jax.random.normal(jax.random.fold_in(keys[12], 1),
                                    (FPN_DIM,), jnp.float32)
    p["ms2one"] = (ms_ws, ms_b)
    return p


# ----------------------------------------------------------------------------
# Forward pass (encoder -> neck -> ms2one), mirroring LATRBackboneOnly.forward
# ----------------------------------------------------------------------------
def latr_backbone_only(params, image_nchw):
    # NCHW -> channel-major (C, N, H, W): channels sit on sublanes of the GEMM
    # RHS/K axis, spatial rows on lanes -> lane-dense loads and stores.
    x = jnp.transpose(image_nchw, (1, 0, 2, 3)).astype(jnp.bfloat16)

    # encoder: out_featList = self.encoder(image)
    c1 = conv2d_cm(x,  params["stem"],   stride=2, relu=True)
    c3 = conv2d_cm(c1, params["layer1"], stride=2, relu=True)
    c4 = conv2d_cm(c3, params["layer2"], stride=2, relu=True)
    c5 = conv2d_cm(c4, params["layer3"], stride=2, relu=True)

    # neck (FPN): first_neck_out = self.neck(out_featList)
    p5 = conv2d_cm(c5, params["lat5"])
    # top-down adds fused into the lateral-conv epilogue (no standalone add op)
    p4 = conv2d_cm(c4, params["lat4"], add_cm=upsample2x_cm(p5))
    p3 = conv2d_cm(c3, params["lat3"], add_cm=upsample2x_cm(p4))
    o3 = conv2d_cm(p3, params["fpn3"])
    o4 = conv2d_cm(p4, params["fpn4"])
    o5 = conv2d_cm(p5, params["fpn5"])

    # ms2one ("Naive"): upsample-to-finest + concat + 1x1 conv.  The concat is
    # never materialized: K-split GEMM over the three levels in one kernel.
    u4 = upsample2x_cm(o4)
    u5 = upsample2x_cm(upsample2x_cm(o5))
    ms_ws, ms_b = params["ms2one"]
    c, n, h3, w3 = o3.shape
    m3 = n * h3 * w3
    neck2d = gemm_cm(
        [o3.reshape(c, m3), u4.reshape(c, m3), u5.reshape(c, m3)],
        ms_ws, ms_b, relu=False, out_dtype=jnp.float32)
    neck = neck2d.reshape(FPN_DIM, n, h3, w3)

    return jnp.transpose(neck, (1, 0, 2, 3))  # channel-major -> NCHW


if __name__ == "__main__":
    key = jax.random.PRNGKey(0)
    img_key, param_key = jax.random.split(key)

    image = jax.random.normal(img_key, (2, 3, 32, 32), jnp.float32)  # NCHW
    params = init_params(param_key)

    out = latr_backbone_only(params, image)
    out = jax.block_until_ready(out)

    assert out.shape == (2, FPN_DIM, 8, 8), out.shape
    assert out.dtype == jnp.float32
    assert bool(jnp.all(jnp.isfinite(out)))
    print("KERNEL_OK")
</pallas_src>

<mosaic_0001>
module attributes {stable_mosaic.version = 11 : i64} {
  func.func @_gemm_cm_kernel(%arg0: i32, %arg1: memref<32x256xbf16, #tpu.memory_space<vmem>>, %arg2: memref<8x32xbf16, #tpu.memory_space<vmem>>, %arg3: memref<8x1xf32, #tpu.memory_space<vmem>>, %arg4: memref<8x256xbf16, #tpu.memory_space<vmem>>) attributes {dimension_semantics = [#tpu.dimension_semantics<parallel>], iteration_bounds = array<i64: 2>, scalar_prefetch = 0 : i64, scratch_operands = 0 : i64, tpu.core_type = #tpu.core_type<tc>, window_params = [{transform_indices = @transform_0, window_bounds = array<i64: 32, 256>}, {pipeline_mode = #tpu.pipeline_mode<synchronous>, transform_indices = @transform_1, window_bounds = array<i64: 8, 32>}, {pipeline_mode = #tpu.pipeline_mode<synchronous>, transform_indices = @transform_2, window_bounds = array<i64: 8, 1>}, {transform_indices = @transform_3, window_bounds = array<i64: 8, 256>}]} {
    %c0 = arith.constant 0 : index
    %c0_0 = arith.constant 0 : index
    %0 = vector.load %arg2[%c0, %c0_0] : memref<8x32xbf16, #tpu.memory_space<vmem>>, vector<8x32xbf16>
    %c0_1 = arith.constant 0 : index
    %c0_2 = arith.constant 0 : index
    %1 = vector.load %arg1[%c0_1, %c0_2] : memref<32x256xbf16, #tpu.memory_space<vmem>>, vector<32x256xbf16>
    %cst = arith.constant dense<0.000000e+00> : vector<8x256xf32>
    %2 = tpu.matmul %0, %1, %cst {dimension_numbers = #tpu.dot_dimension_numbers<[1], [0], [0], [1], [0, 0, 1, 1], [], []>} : vector<8x32xbf16>, vector<32x256xbf16>, vector<8x256xf32> -> vector<8x256xf32>
    %c0_3 = arith.constant 0 : index
    %c0_4 = arith.constant 0 : index
    %3 = vector.load %arg3[%c0_3, %c0_4] : memref<8x1xf32, #tpu.memory_space<vmem>>, vector<8x1xf32>
    %4 = vector.broadcast %3 : vector<8x1xf32> to vector<8x256xf32>
    %5 = arith.addf %2, %4 : vector<8x256xf32>
    %cst_5 = arith.constant 0.000000e+00 : f32
    %6 = vector.broadcast %cst_5 : f32 to vector<8x256xf32>
    %7 = arith.maximumf %5, %6 : vector<8x256xf32>
    %8 = arith.truncf %7 : vector<8x256xf32> to vector<8x256xbf16>
    %c0_6 = arith.constant 0 : index
    %c0_7 = arith.constant 0 : index
    %9 = vector.load %arg4[%c0_6, %c0_7] : memref<8x256xbf16, #tpu.memory_space<vmem>>, vector<8x256xbf16>
    tpu.vector_store %arg4[%c0_6, %c0_7], %8 {strides = array<i32>} : memref<8x256xbf16, #tpu.memory_space<vmem>>, vector<8x256xbf16>,
    return
  }
  func.func @transform_0(%arg0: i32) -> (i32, i32) {
    %c0_i32 = arith.constant 0 : i32
    %c0_i32_0 = arith.constant 0 : i32
    return %c0_i32, %arg0 : i32, i32
  }
  func.func @transform_1(%arg0: i32) -> (i32, i32) {
    %c0_i32 = arith.constant 0 : i32
    %c0_i32_0 = arith.constant 0 : i32
    %c0_i32_1 = arith.constant 0 : i32
    return %c0_i32, %c0_i32_0 : i32, i32
  }
  func.func @transform_2(%arg0: i32) -> (i32, i32) {
    %c0_i32 = arith.constant 0 : i32
    %c0_i32_0 = arith.constant 0 : i32
    %c0_i32_1 = arith.constant 0 : i32
    return %c0_i32, %c0_i32_0 : i32, i32
  }
  func.func @transform_3(%arg0: i32) -> (i32, i32) {
    %c0_i32 = arith.constant 0 : i32
    %c0_i32_0 = arith.constant 0 : i32
    return %c0_i32, %arg0 : i32, i32
  }
}

</mosaic_0001>

<bundles_post_ra>
// kernel: tpu_custom_call.1
= control target key start
LH: loop header
LB: loop body
LE: loop exit
PB: predicated region body
PF: predicated region fallthrough
CT: control target
= control target key end

     0   :  { %8 = vsyncpa [#allocation3], 0  ;;  %s737_s0 = inlined_call_operand.hbm [shape: bf16[32,512], index: 0, kind: input, shape index: {}]   ;;  %s738_s1 = inlined_call_operand.vmem [shape: bf16[8,32], index: 1, kind: input, shape index: {}]   ;;  %s739_s2 = inlined_call_operand.vmem [shape: f32[8,1], index: 2, kind: input, shape index: {}]   ;;  %s740_s3 = inlined_call_operand.hbm [shape: bf16[8,512], index: 3, kind: output, shape index: {}]  }
   0x1   :  { %10 = vsyncpa [#allocation3 + $0x1], 0 }
   0x2   :  { %11 = vsyncpa [#allocation4], 0 }
   0x3   :  { %13 = vsyncpa [#allocation4 + $0x1], 0  ;;  %s568_s12 = smov 0   ;;  %s570_s13 = smov 0  }
   0x4   :  { %s572_s14 = smov 0   ;;  %s574_s15 = smov 0  }
   0x5 LB: > { %s589_s16 = sadd.s32 4294967295, %s540_s15   ;;  %s364_s17 = sadd.s32 4294967294, %s540_s15   ;;  %s540_s15 = sphi %s574_s15, %s754_s15   ;;  %s536_s14 = sphi %s572_s14, %s753_s14   ;;  %s532_s13 = sphi %s570_s13, %s752_s13   ;;  %s528_s12 = sphi %s568_s12, %s751_s12  }
   0x6   : > { %s593_s18 = sadd.s32 1, %s540_s15   ;;  %s26_s19 = sadd.s32 1, %s536_s14 }
   0x7   : > { %s23_s20 = ssub.s32 %s540_s15, %s593_s18  ;;  %p33_p0 = scmp.ne.s32.totalorder %s536_s14, %s532_s13 }
   0x8   : > { %p24_p1 = scmp.eq.s32.totalorder %s23_s20, 0  ;;  %p34_p2 = scmp.eq.s32.totalorder %s540_s15, 0 }
   0x9   : > { %p39_p3 = scmp.ne.s32.totalorder %s532_s13, %s528_s12  ;;  %p40_p4 = scmp.eq.s32.totalorder %s589_s16, 0 }
   0xa   : > { %s605_s21 = scalar_select %p24_p1, %s536_s14, %s26_s19  }
   0xb   : > { %p607_p5 = por %p34_p2, %p33_p0  ;;  %p611_p6 = por %p40_p4, %p39_p3 }
   0xc   : > { %p105_p7 = scmp.eq.s32.totalorder %s589_s16, 1  ;;  %p111_p8 = scmp.eq.s32.totalorder %s364_s17, 1 }
   0xd   : > { %p399_p10 = scmp.lt.s32.totalorder %s540_s15, 2  ;;  %s137_s26 = sand.u32 1, %s536_s14  }
   0xe   : > { %p618_p11 = por %p105_p7, %p33_p0  ;;  %p622_p12 = por %p111_p8, %p39_p3 }
   0xf   : > { %s384_s27 = sshll.u32 %s540_s15, 7  ;;  %s367_s28 = sshll.u32 %s137_s26, 5 }
  0x10   : > { %s744_s24 = scalar_select %p618_p11, 1, 0 }
  0x11   : > { %s745_s25 = scalar_select %p622_p12, 1, 0 }
  0x12   : > { %s631_s4 = scalar_lea.hbm %s737_s0, %s384_s27  ;;  %s141_s5 = scalar_lea.vmem [#allocation2], %s367_s28 }
  0x13   : > { %s148_s6 = sshll.u32 %s141_s5, 4  ;;  %p635_p13 = pnand %p399_p10, %p607_p5  ;;  %s639_s6 = int_to_ptr.vmem [resolvable:$true] %s148_s6 }
  0x14   : > { %s642_s8 = scalar_lea.sflag [#allocation3], %s137_s26  ;;  %s444_s9 = scalar_lea.hbm %s631_s4, 512 }
  0x15   : > { %p445_p1 = scmp.ne.s32.totalorder %s631_s4, %s444_s9  ;;  %p446_p2 = pneg %p635_p13 }
  0x16   : > { %s449_s17 = scalar_lea.hbm %s737_s0, 1024  ;;  %p450_p5 = scmp.lt.u32.totalorder %s631_s4, %s737_s0 }
  0x17   : > { %p447_p3 = pnand %p446_p2, %p445_p1  ;;  %p451_p7 = scmp.lt.u32.totalorder %s449_s17, %s444_s9 }
  0x18   : > { %p453_p10 = scmp.lt.u32.totalorder %s444_s9, %s631_s4 }
  0x19   : > { %p448_p4 = pneg %p447_p3  ;;  %p452_p8 = por %p451_p7, %p450_p5 }
  0x1b   : > { %p454_p9 = por %p453_p10, %p452_p8 }
  0x1d   : > { %p455_p0 = pnand %p454_p9, %p448_p4 }
  0x1f   : > { %458 = shalt.err (!%p455_p0)
}
  0x20   : > { %s459_s22 = scalar_lea.vmem %s639_s6, 512  ;;  %s542_s26 = smov [#allocation2]  }
  0x21   : > { %p460_p1 = scmp.ne.s32.totalorder %s639_s6, %s459_s22  ;;  %s464_s27 = sshll.u32 %s542_s26, 4  ;;  %s465_s27 = int_to_ptr.vmem [resolvable:$false] %s464_s27 }
  0x22   : > { %s466_s28 = scalar_lea.vmem %s465_s27, 1024  ;;  %p467_p11 = scmp.lt.s32.totalorder %s639_s6, %s465_s27 }
  0x23   : > { %p462_p3 = pnand %p460_p1, %p446_p2  ;;  %p468_p5 = scmp.lt.s32.totalorder %s466_s28, %s459_s22 }
  0x25   : > { %p463_p12 = pneg %p462_p3  ;;  %p469_p7 = por %p468_p5, %p467_p11 }
  0x27   : > { %p470_p8 = pnand %p469_p7, %p463_p12 }
  0x29   : > { %473 = shalt.err (!%p470_p8)
}
  0x2a   : > { %s543_s29 = smov 256   ;;  %s544_s30 = smov 128  }
  0x2b   : > { %s545_s5 = smov 8   ;;  %p156_p9 = scmp.lt.s32.totalorder %s540_s15, 3 }
  0x2c   : > { %394 = dma.hbm_to_vmem [thread:$0]  (!%p635_p13), %s631_s4, 512, %s639_s6, %s642_s8, %s543_s29, %s544_s30, %s545_s5  }
  0x2d   : > { %p747_p0 = scmp.ge.s32.totalorder %s540_s15, 1 }
  0x2f   : > { %p157_p2 = pnand %p747_p0, %p156_p9 }
  0x30   : > { %s674_s9 = sand.u32 (!%p157_p2), 1, %s532_s13  }
  0x31   : > { %160 = sbr.rel (%p157_p2) target bundleno = 300 (0x12c), region = 32  ;;  %s371_s10 = sshll.u32 (!%p157_p2), %s674_s9, 5 }
  0x32   : > { %s163_s11 = scalar_lea.sflag (!%p157_p2), [#allocation3], %s674_s9  ;;  %s166_s17 = scalar_lea.vmem (!%p157_p2), [#allocation2], %s371_s10 }
  0x38   : > { %519 = dma.done.wait (%p611_p6), %s163_s11, 512  }
  0x39   : > { %521 = vsyncadd (%p611_p6), %s163_s11, 4294966784  ;;  %v546_v0 = vmov 0   ;;  %v438_v1 = vld [vmem:[%s166_s17 + $0x4] ss:$8 sps:$4 sm:$0xff]   ;;  %v440_v2 = vld [vmem:[%s166_s17] ss:$8 sps:$4 sm:$0xff]  }
  0x3a   : > { %259 = vmatprep.mubr.bf16.mxu0 %v546_v0  ;;  %437 = vset.pattern.permute.xlu0 %v546_v0  ;;  %v441_v3 = vld [vmem:[%s166_s17 + $0x14] ss:$8 sps:$4 sm:$0xff]   ;;  %v443_v4 = vld [vmem:[%s166_s17 + $0x10] ss:$8 sps:$4 sm:$0xff]   ;;  %v197_v5 = vld [vmem:[%s739_s2] sm:$0xff]  ;;  %vm223_vm0 = vcmask 261120  }
  0x3b   : > { %227 = vmatprep.subr.bf16.mxu0 %v438_v1  ;;  %200 = vperm.xlu0 %437, %v197_v5   ;;  %v192_v6 = vld [vmem:[%s738_s1] sm:$0xf]  ;;  %s372_s8 = sshll.u32 %s674_s9, 3  ;;  %s386_s19 = sshll.u32 %s589_s16, 7 }
  0x3c   : > { %228 = vmatpush1.bf16.msra.mxu0 %v440_v2  ;;  %s188_s20 = scalar_lea.vmem [#allocation5], %s372_s8  ;;  %s693_s28 = scalar_lea.hbm %s740_s3, %s386_s19 }
  0x3d   : > { %229 = vmatprep.subr.bf16.mxu0 %v441_v3  ;;  %s294_s22 = sshll.u32 %s188_s20, 4  ;;  %s280_s29 = scalar_lea.sflag [#allocation4], %s674_s9  ;;  %s695_s22 = int_to_ptr.vmem [resolvable:$true] %s294_s22 }
  0x3e   : > { %s474_s30 = scalar_lea.vmem %s695_s22, 128  ;;  %p748_p11 = scmp.ne.s32.totalorder %s744_s24, 0 }
  0x3f   : > { %p475_p6 = scmp.ne.s32.totalorder %s695_s22, %s474_s30  ;;  %s547_s16 = smov [#allocation5]  }
  0x40   : > { %230 = vmatpush1.bf16.msra.mxu0 %v443_v4  ;;  %s478_s5 = sshll.u32 %s547_s16, 4  ;;  %s479_s5 = int_to_ptr.vmem [resolvable:$false] %s478_s5 }
  0x41   : > { %p476_p12 = pnand %p475_p6, %p748_p11  ;;  %s480_s10 = scalar_lea.vmem %s479_s5, 256 }
  0x42   : > { %p481_p4 = scmp.lt.s32.totalorder %s695_s22, %s479_s5  ;;  %p482_p10 = scmp.lt.s32.totalorder %s480_s10, %s474_s30 }
  0x43   : > { %377 = vmatmul.mubr.msk.bf16.vlgmr.msra.gmra.mrb[0].mxu0 %vm223_vm0, %v192_v6  ;;  %p477_p13 = pneg %p476_p12 }
  0x44   : > { %p483_p1 = por %p482_p10, %p481_p4 }
  0x46   : > { %p484_p3 = pnand %p483_p1, %p477_p13 }
  0xba   : > { %v201_v7 = vpop.permute.xlu0 %200 }
 0x116   : > { %v261_v8 = vpop.f32.mrb[0].mxu0 }
 0x117   : > { %v262_v9 = vadd.f32 %v261_v8, %v201_v7  ;;  %v263_v10 = vpop.f32.mrb[1].mxu0 }
 0x118   : > { %v264_v11 = vadd.f32 %v263_v10, %v201_v7  ;;  %v265_v12 = vpop.f32.mrb[2].mxu0 }
 0x119   : > { %v268_v13 = vmax.f32 %v262_v9, 0.0  ;;  %v266_v14 = vpop.f32.mrb[3].mxu0 }
 0x11a   : > { %v269_v15 = vmax.f32 %v264_v11, 0.0 }
 0x11c   : > { %v385_v16 = vpack.c.bf16 %v269_v15, %v268_v13 }
 0x11e   : > { %278 = vst [vmem:[%s188_s20] sm:$0xff] %v385_v16 }
 0x11f   : > { %487 = shalt.err (!%p484_p3)
}
 0x120   : > { %s488_s9 = scalar_lea.hbm %s693_s28, 128  ;;  %s492_s4 = scalar_lea.hbm %s740_s3, 256 }
 0x121   : > { %p489_p5 = scmp.ne.s32.totalorder %s693_s28, %s488_s9  ;;  %p493_p9 = scmp.lt.u32.totalorder %s693_s28, %s740_s3 }
 0x122   : > { %p494_p0 = scmp.lt.u32.totalorder %s492_s4, %s488_s9  ;;  %p496_p6 = scmp.lt.u32.totalorder %s488_s9, %s693_s28 }
 0x123   : > { %p490_p7 = pnand %p489_p5, %p748_p11 }
 0x124   : > { %p495_p2 = por %p494_p0, %p493_p9 }
 0x125   : > { %p491_p8 = pneg %p490_p7 }
 0x126   : > { %p497_p12 = por %p496_p6, %p495_p2 }
 0x128   : > { %p498_p13 = pnand %p497_p12, %p491_p8 }
 0x12a   : > { %501 = shalt.err (!%p498_p13)
}
 0x12b   : > { %389 = dma.vmem_to_hbm [thread:$0]  (%p748_p11), %s695_s22, 128, %s693_s28, %s280_s29  }
 0x12c PF: > { %s306_s7 = sand.u32 1, %s528_s12   ;;  %p749_p4 = scmp.ne.s32.totalorder %s745_s25, 0 }
 0x12d   : > { %p750_p10 = scmp.ge.s32.totalorder %s540_s15, 2  ;;  %s307_s8 = scalar_lea.sflag [#allocation4], %s306_s7 }
 0x12f   : > { %p396_p1 = pnand %p750_p10, %p749_p4 }
 0x131   : > { %523 = dma.done.wait (!%p396_p1), %s307_s8, 128  }
 0x132   : > { %525 = vsyncadd (!%p396_p1), %s307_s8, 4294967168  ;;  %p16_p3 = scmp.ge.s32.totalorder %s593_s18, 4   ;;  %s751_s12 = smov %s532_s13 }
 0x133   : > { %s752_s13 = smov %s536_s14  ;;  %s753_s14 = smov %s605_s21 }
 0x134   : > { %s754_s15 = smov %s593_s18  ;;  %18 = sbr.rel (!%p16_p3) target bundleno = 5 (0x5), region = 77 }
 0x13b   :  { %312 = vsyncpa [#allocation3], 1 }
 0x13c   :  { %314 = vsyncpa [#allocation3 + $0x1], 1 }
 0x13d   :  { %315 = vsyncpa [#allocation4], 1 }
 0x13e   :  { %317 = vsyncpa [#allocation4 + $0x1], 1 }

</bundles_post_ra>
